<compile_context>
chip_gen: v5e
topology: v5e:2x2
jax: 0.10.0
libtpu: 0.0.40
codegen_flags: <defaults>
</compile_context>

<pallas_src>
import jax
import jax.numpy as jnp
from jax.experimental import pallas as pl
from jax.experimental.pallas import tpu as pltpu

LN_EPS = 1e-5  # nn.LayerNorm default


def _round_up(a, b):
    return ((a + b - 1) // b) * b


def _physical_vmem_bytes():
    """Physical VMEM per TensorCore; conservative 64 MiB fallback (v7x)."""
    default = 64 << 20
    try:
        info_fn = getattr(pltpu, "get_tpu_info", None)
        if info_fn is None:
            return default
        v = getattr(info_fn(), "vmem_capacity_bytes", None)
        if v:
            return int(v)
    except Exception:
        pass
    return default


def _vmem_usage(tm, d_model, fft, itemsize, out_itemsize):
    """Estimate of VMEM bytes for one grid step (double-buffered in/out + acc)."""
    return (2 * tm * d_model * itemsize          # x tile
            + 2 * tm * d_model * out_itemsize    # out tile
            + 2 * d_model * fft * itemsize       # W1 chunk
            + 2 * fft * d_model * itemsize       # W2 chunk
            + tm * d_model * 4)                  # f32 accumulator scratch


def _ff_candidates(d_ff_pad):
    """ff_tile candidates: resident (full d_ff) first, then big 256-multiples."""
    cands = [d_ff_pad]
    c = min(1024, d_ff_pad)
    c -= c % 256
    while c >= 256:
        if d_ff_pad % c == 0:
            cands.append(c)
        c -= 256
    if d_ff_pad % 128 == 0:
        cands.append(128)
    seen, out = set(), []
    for c in cands:
        if c not in seen:
            seen.add(c)
            out.append(c)
    return out


def _choose_tiles(M, d_model, d_ff_pad, itemsize, out_itemsize, budget):
    """Pick (row_tile, ff_tile) under a VMEM budget.

    Row tile is pushed as high as possible (weight HBM traffic ~ 1/row_tile);
    ff_tile is traded down before row_tile when the budget is tight.
    """
    # Keep at least two row tiles when there are enough rows (v7x has 2 TCs).
    if M > 8:
        row_cap = _round_up((M + 1) // 2, 8)
    else:
        row_cap = _round_up(max(M, 1), 8)
    target_tm = 1024 if budget >= (72 << 20) else 512   # 128 MiB gens vs v7x
    tm = max(8, min(target_tm, row_cap))

    while True:
        for fft in _ff_candidates(d_ff_pad):
            if _vmem_usage(tm, d_model, fft, itemsize, out_itemsize) <= budget:
                return tm, fft
        if tm <= 8:
            return 8, _ff_candidates(d_ff_pad)[-1]
        tm = max(8, _round_up(tm // 2, 8))


def _ffn_ln_kernel(x_ref, w1_ref, w2_ref, o_ref, acc_ref):
    # x_ref  : [TM, d_model]      (row tile; same block across the k axis)
    # w1_ref : [d_model, ff_tile] (k-th column chunk of W1)
    # w2_ref : [ff_tile, d_model] (k-th row    chunk of W2)
    # o_ref  : [TM, d_model]
    # acc_ref: [TM, d_model] f32 accumulator (persists across k)
    k = pl.program_id(1)

    @pl.when(k == 0)
    def _():
        acc_ref[...] = jnp.zeros_like(acc_ref)

    x = x_ref[...]  # native dtype straight to the MXU (bf16 stays bf16)
    h = jnp.dot(x, w1_ref[...], preferred_element_type=jnp.float32)
    h = jnp.maximum(h, 0.0).astype(w2_ref.dtype)  # ReLU; back to weight dtype
    acc_ref[...] += jnp.dot(h, w2_ref[...], preferred_element_type=jnp.float32)

    @pl.when(k == pl.num_programs(1) - 1)
    def _():
        # Fold residual into the accumulator, then LayerNorm in f32
        # (biased variance, gamma=1, beta=0).
        acc_ref[...] += x.astype(jnp.float32)
        y = acc_ref[...]
        mean = jnp.mean(y, axis=-1, keepdims=True)
        centered = y - mean
        var = jnp.mean(centered * centered, axis=-1, keepdims=True)
        o_ref[...] = (centered * jax.lax.rsqrt(var + LN_EPS)).astype(o_ref.dtype)


def poswise_feedforward_net(x, w1, w2, *, row_tile=None, ff_tile=None,
                            compute_dtype=None, vmem_limit_bytes=None):
    """x: [B, S, d_model]; w1: [d_model, d_ff]; w2: [d_ff, d_model].

    compute_dtype: optional dtype (e.g. jnp.bfloat16) for MXU operands; the
    accumulation and LayerNorm stay f32 and the output keeps x's dtype.
    """
    B, S, d_model = x.shape
    d_ff = w1.shape[1]
    assert w1.shape == (d_model, d_ff)
    assert w2.shape == (d_ff, d_model)

    out_dtype = x.dtype
    if compute_dtype is not None:
        compute_dtype = jnp.dtype(compute_dtype)
        x = x.astype(compute_dtype)
        w1 = w1.astype(compute_dtype)
        w2 = w2.astype(compute_dtype)
    itemsize = jnp.dtype(x.dtype).itemsize
    out_itemsize = jnp.dtype(out_dtype).itemsize

    M = B * S
    x2d = x.reshape(M, d_model)

    # Pad d_ff to a lane-aligned multiple of 128 (exact: zero cols of W1 give
    # ReLU outputs of 0 which meet zero rows of W2).
    d_ff_pad = _round_up(d_ff, 128)
    if d_ff_pad != d_ff:
        w1 = jnp.pad(w1, ((0, 0), (0, d_ff_pad - d_ff)))
        w2 = jnp.pad(w2, ((0, d_ff_pad - d_ff), (0, 0)))

    phys_vmem = _physical_vmem_bytes()
    budget = (phys_vmem * 3) // 4

    tm_auto, fft_auto = _choose_tiles(M, d_model, d_ff_pad, itemsize,
                                      out_itemsize, budget)
    tm = tm_auto if row_tile is None else min(row_tile, _round_up(M, 8))
    tm = max(8, _round_up(tm, 8))
    fft = fft_auto if ff_tile is None else ff_tile
    assert d_ff_pad % fft == 0, "ff_tile must divide padded d_ff"
    n_ff = d_ff_pad // fft

    # Pad rows so tm divides them; zero rows stay zero through LN (0*rsqrt(eps)).
    M_pad = _round_up(M, tm)
    if M_pad != M:
        x2d = jnp.pad(x2d, ((0, M_pad - M), (0, 0)))
    n_row_tiles = M_pad // tm

    if vmem_limit_bytes is None:
        need = _vmem_usage(tm, d_model, fft, itemsize, out_itemsize)
        vmem_limit_bytes = int(min((phys_vmem * 9) // 10,
                                   max((need * 13) // 10, 32 << 20)))

    # Weights are DMA'd once total when n_ff == 1 (constant block index),
    # otherwise once per row tile.
    weight_streams = 1 if n_ff == 1 else n_row_tiles
    weight_bytes = (w1.size + w2.size) * itemsize
    cost = pl.CostEstimate(
        flops=4 * M_pad * d_model * d_ff_pad,      # two matmuls, 2*M*dm*dff each
        transcendentals=M_pad,                     # one rsqrt per row
        bytes_accessed=(x2d.size * itemsize
                        + M_pad * d_model * out_itemsize
                        + weight_streams * weight_bytes),
    )

    out2d = pl.pallas_call(
        _ffn_ln_kernel,
        out_shape=jax.ShapeDtypeStruct((M_pad, d_model), out_dtype),
        grid_spec=pltpu.PrefetchScalarGridSpec(
            num_scalar_prefetch=0,
            grid=(n_row_tiles, n_ff),
            in_specs=[
                pl.BlockSpec((tm, d_model), lambda i, k: (i, 0)),
                pl.BlockSpec((d_model, fft), lambda i, k: (0, k)),
                pl.BlockSpec((fft, d_model), lambda i, k: (k, 0)),
            ],
            out_specs=pl.BlockSpec((tm, d_model), lambda i, k: (i, 0)),
            scratch_shapes=[pltpu.VMEM((tm, d_model), jnp.float32)],
        ),
        compiler_params=pltpu.CompilerParams(
            dimension_semantics=("parallel", "arbitrary"),
            vmem_limit_bytes=int(vmem_limit_bytes)),
        cost_estimate=cost,
    )(x2d, w1, w2)

    if M_pad != M:
        out2d = out2d[:M]
    return out2d.reshape(B, S, d_model)


def _reference(x, w1, w2):
    """Pure-JAX reference (same math as the PyTorch forward), all f32."""
    xf = x.astype(jnp.float32)
    y = jnp.maximum(xf @ w1.astype(jnp.float32), 0.0) @ w2.astype(jnp.float32) + xf
    mu = jnp.mean(y, axis=-1, keepdims=True)
    var = jnp.mean((y - mu) ** 2, axis=-1, keepdims=True)
    return (y - mu) / jnp.sqrt(var + LN_EPS)


if __name__ == "__main__":
    # Small shapes implied by the module's forward: [batch, seq_len, d_model]
    batch, seq_len, d_model, d_ff = 2, 8, 32, 64

    key = jax.random.PRNGKey(0)
    kx, k1, k2 = jax.random.split(key, 3)

    x = jax.random.normal(kx, (batch, seq_len, d_model), dtype=jnp.float32)
    # Deterministic synthetic weights (Linear has bias=False in the module).
    w1 = (jax.random.normal(k1, (d_model, d_ff), dtype=jnp.float32)
          * (1.0 / jnp.sqrt(d_model)))
    w2 = (jax.random.normal(k2, (d_ff, d_model), dtype=jnp.float32)
          * (1.0 / jnp.sqrt(d_ff)))

    ref = _reference(x, w1, w2)

    # f32 path: exact-precision check against the reference.
    out = poswise_feedforward_net(x, w1, w2)
    jax.block_until_ready(out)
    assert out.shape == ref.shape
    assert jnp.allclose(out, ref, atol=1e-4, rtol=1e-4), "f32 mismatch vs reference"

    # bf16 compute path (MXU-native on all generations); looser tolerance.
    out_bf16 = poswise_feedforward_net(x, w1, w2, compute_dtype=jnp.bfloat16)
    jax.block_until_ready(out_bf16)
    assert out_bf16.shape == ref.shape
    assert jnp.allclose(out_bf16.astype(jnp.float32), ref, atol=1e-1, rtol=1e-1), \
        "bf16 mismatch vs reference"

    print("KERNEL_OK")
</pallas_src>

<mosaic_0001>
module attributes {stable_mosaic.version = 11 : i64} {
  func.func @_ffn_ln_kernel(%arg0: i32, %arg1: i32, %arg2: memref<8x32xf32, #tpu.memory_space<vmem>>, %arg3: memref<32x128xf32, #tpu.memory_space<vmem>>, %arg4: memref<128x32xf32, #tpu.memory_space<vmem>>, %arg5: memref<8x32xf32, #tpu.memory_space<vmem>>, %arg6: memref<8x32xf32, #tpu.memory_space<vmem>>) attributes {dimension_semantics = [#tpu.dimension_semantics<parallel>, #tpu.dimension_semantics<arbitrary>], iteration_bounds = array<i64: 2, 1>, scalar_prefetch = 0 : i64, scratch_operands = 1 : i64, tpu.core_type = #tpu.core_type<tc>, window_params = [{transform_indices = @transform_0, window_bounds = array<i64: 8, 32>}, {transform_indices = @transform_1, window_bounds = array<i64: 32, 128>}, {transform_indices = @transform_2, window_bounds = array<i64: 128, 32>}, {transform_indices = @transform_3, window_bounds = array<i64: 8, 32>}]} {
    %c0_i32 = arith.constant 0 : i32
    %0 = arith.cmpi eq, %arg1, %c0_i32 : i32
    %1 = arith.extui %0 : i1 to i32
    %c0_i32_0 = arith.constant 0 : i32
    %2 = arith.cmpi ne, %1, %c0_i32_0 : i32
    scf.if %2 {
      %cst_14 = arith.constant 0.000000e+00 : f32
      %16 = vector.broadcast %cst_14 : f32 to vector<8x32xf32>
      %c0_15 = arith.constant 0 : index
      %c0_16 = arith.constant 0 : index
      %17 = vector.load %arg6[%c0_15, %c0_16] : memref<8x32xf32, #tpu.memory_space<vmem>>, vector<8x32xf32>
      tpu.vector_store %arg6[%c0_15, %c0_16], %16 {strides = array<i32>} : memref<8x32xf32, #tpu.memory_space<vmem>>, vector<8x32xf32>,
    } else {
    }
    %c0 = arith.constant 0 : index
    %c0_1 = arith.constant 0 : index
    %3 = vector.load %arg2[%c0, %c0_1] : memref<8x32xf32, #tpu.memory_space<vmem>>, vector<8x32xf32>
    %c0_2 = arith.constant 0 : index
    %c0_3 = arith.constant 0 : index
    %4 = vector.load %arg3[%c0_2, %c0_3] : memref<32x128xf32, #tpu.memory_space<vmem>>, vector<32x128xf32>
    %cst = arith.constant dense<0.000000e+00> : vector<8x128xf32>
    %5 = tpu.matmul %3, %4, %cst {dimension_numbers = #tpu.dot_dimension_numbers<[1], [0], [0], [1], [0, 0, 1, 1], [], []>} : vector<8x32xf32>, vector<32x128xf32>, vector<8x128xf32> -> vector<8x128xf32>
    %cst_4 = arith.constant 0.000000e+00 : f32
    %6 = vector.broadcast %cst_4 : f32 to vector<8x128xf32>
    %7 = arith.maximumf %5, %6 : vector<8x128xf32>
    %c0_5 = arith.constant 0 : index
    %c0_6 = arith.constant 0 : index
    %8 = vector.load %arg6[%c0_5, %c0_6] : memref<8x32xf32, #tpu.memory_space<vmem>>, vector<8x32xf32>
    %c0_7 = arith.constant 0 : index
    %c0_8 = arith.constant 0 : index
    %9 = vector.load %arg4[%c0_7, %c0_8] : memref<128x32xf32, #tpu.memory_space<vmem>>, vector<128x32xf32>
    %cst_9 = arith.constant dense<0.000000e+00> : vector<8x32xf32>
    %10 = tpu.matmul %7, %9, %cst_9 {dimension_numbers = #tpu.dot_dimension_numbers<[1], [0], [0], [1], [0, 0, 1, 1], [], []>} : vector<8x128xf32>, vector<128x32xf32>, vector<8x32xf32> -> vector<8x32xf32>
    %11 = arith.addf %8, %10 : vector<8x32xf32>
    %c0_10 = arith.constant 0 : index
    %c0_11 = arith.constant 0 : index
    %12 = vector.load %arg6[%c0_10, %c0_11] : memref<8x32xf32, #tpu.memory_space<vmem>>, vector<8x32xf32>
    tpu.vector_store %arg6[%c0_10, %c0_11], %11 {strides = array<i32>} : memref<8x32xf32, #tpu.memory_space<vmem>>, vector<8x32xf32>,
    %c0_i32_12 = arith.constant 0 : i32
    %13 = arith.cmpi eq, %arg1, %c0_i32_12 : i32
    %14 = arith.extui %13 : i1 to i32
    %c0_i32_13 = arith.constant 0 : i32
    %15 = arith.cmpi ne, %14, %c0_i32_13 : i32
    scf.if %15 {
      %c0_14 = arith.constant 0 : index
      %c0_15 = arith.constant 0 : index
      %16 = vector.load %arg6[%c0_14, %c0_15] : memref<8x32xf32, #tpu.memory_space<vmem>>, vector<8x32xf32>
      %17 = arith.addf %16, %3 : vector<8x32xf32>
      %c0_16 = arith.constant 0 : index
      %c0_17 = arith.constant 0 : index
      %18 = vector.load %arg6[%c0_16, %c0_17] : memref<8x32xf32, #tpu.memory_space<vmem>>, vector<8x32xf32>
      tpu.vector_store %arg6[%c0_16, %c0_17], %17 {strides = array<i32>} : memref<8x32xf32, #tpu.memory_space<vmem>>, vector<8x32xf32>,
      %c0_18 = arith.constant 0 : index
      %c0_19 = arith.constant 0 : index
      %19 = vector.load %arg6[%c0_18, %c0_19] : memref<8x32xf32, #tpu.memory_space<vmem>>, vector<8x32xf32>
      %cst_20 = arith.constant dense<0.000000e+00> : vector<8xf32>
      %20 = vector.multi_reduction <add>, %19, %cst_20 [1] : vector<8x32xf32> to vector<8xf32>
      %21 = vector.shape_cast %20 : vector<8xf32> to vector<8x1xf32>
      %cst_21 = arith.constant 3.200000e+01 : f32
      %22 = vector.broadcast %cst_21 : f32 to vector<8x1xf32>
      %23 = arith.divf %21, %22 : vector<8x1xf32>
      %24 = vector.broadcast %23 : vector<8x1xf32> to vector<8x32xf32>
      %25 = arith.subf %19, %24 : vector<8x32xf32>
      %26 = arith.mulf %25, %25 : vector<8x32xf32>
      %cst_22 = arith.constant dense<0.000000e+00> : vector<8xf32>
      %27 = vector.multi_reduction <add>, %26, %cst_22 [1] : vector<8x32xf32> to vector<8xf32>
      %28 = vector.shape_cast %27 : vector<8xf32> to vector<8x1xf32>
      %cst_23 = arith.constant 3.200000e+01 : f32
      %29 = vector.broadcast %cst_23 : f32 to vector<8x1xf32>
      %30 = arith.divf %28, %29 : vector<8x1xf32>
      %cst_24 = arith.constant 9.99999974E-6 : f32
      %31 = vector.broadcast %cst_24 : f32 to vector<8x1xf32>
      %32 = arith.addf %30, %31 : vector<8x1xf32>
      %33 = math.rsqrt %32 : vector<8x1xf32>
      %34 = vector.broadcast %33 : vector<8x1xf32> to vector<8x32xf32>
      %35 = arith.mulf %25, %34 : vector<8x32xf32>
      %c0_25 = arith.constant 0 : index
      %c0_26 = arith.constant 0 : index
      %36 = vector.load %arg5[%c0_25, %c0_26] : memref<8x32xf32, #tpu.memory_space<vmem>>, vector<8x32xf32>
      tpu.vector_store %arg5[%c0_25, %c0_26], %35 {strides = array<i32>} : memref<8x32xf32, #tpu.memory_space<vmem>>, vector<8x32xf32>,
    } else {
    }
    return
  }
  func.func @transform_0(%arg0: i32, %arg1: i32) -> (i32, i32) {
    %c0_i32 = arith.constant 0 : i32
    %c0_i32_0 = arith.constant 0 : i32
    return %arg0, %c0_i32 : i32, i32
  }
  func.func @transform_1(%arg0: i32, %arg1: i32) -> (i32, i32) {
    %c0_i32 = arith.constant 0 : i32
    %c0_i32_0 = arith.constant 0 : i32
    return %c0_i32, %arg1 : i32, i32
  }
  func.func @transform_2(%arg0: i32, %arg1: i32) -> (i32, i32) {
    %c0_i32 = arith.constant 0 : i32
    %c0_i32_0 = arith.constant 0 : i32
    return %arg1, %c0_i32 : i32, i32
  }
  func.func @transform_3(%arg0: i32, %arg1: i32) -> (i32, i32) {
    %c0_i32 = arith.constant 0 : i32
    %c0_i32_0 = arith.constant 0 : i32
    return %arg0, %c0_i32 : i32, i32
  }
}

</mosaic_0001>

<bundles_post_ra>
// kernel: tpu_custom_call.1
= control target key start
LH: loop header
LB: loop body
LE: loop exit
PB: predicated region body
PF: predicated region fallthrough
CT: control target
= control target key end

     0   :  { %8 = vsyncpa [#allocation4], 0  ;;  %s783_s0 = inlined_call_operand.vmem [shape: f32[16,32], index: 0, kind: input, shape index: {}]   ;;  %s784_s1 = inlined_call_operand.vmem [shape: f32[32,128], index: 1, kind: input, shape index: {}]   ;;  %s785_s2 = inlined_call_operand.vmem [shape: f32[128,32], index: 2, kind: input, shape index: {}]   ;;  %s786_s3 = inlined_call_operand.hbm [shape: f32[16,32], index: 3, kind: output, shape index: {}]  }
   0x1   :  { %10 = vsyncpa [#allocation4 + $0x1], 0  ;;  %s619_s12 = smov 0   ;;  %s621_s13 = smov 0  }
   0x2   :  { %s623_s14 = smov 0   ;;  %s625_s15 = smov 0  }
   0x3   :  { %s627_s16 = smov 0   ;;  %s629_s17 = smov 0  }
   0x4 LB: > { %s442_s18 = sadd.s32 4294967295, %s595_s17   ;;  %s443_s19 = sadd.s32 4294967294, %s595_s17   ;;  %s595_s17 = sphi %s629_s17, %s16_s17   ;;  %s591_s16 = sphi %s627_s16, %s793_s16   ;;  %s587_s15 = sphi %s625_s15, %s792_s15   ;;  %s583_s14 = sphi %s623_s14, %s791_s14   ;;  %s579_s13 = sphi %s621_s13, %s790_s13   ;;  %s575_s12 = sphi %s619_s12, %s789_s12  }
   0x5   : > { %s28_s20 = sadd.s32 1, %s591_s16  ;;  %s113_s21 = sadd.s32 1, %s583_s14 }
   0x6   : > { %p30_p0 = scmp.ge.s32.totalorder %s28_s20, 2  ;;  %p123_p1 = scmp.ne.s32.totalorder %s583_s14, %s579_s13 }
   0x7   : > { %p124_p2 = scmp.eq.s32.totalorder %s442_s18, 1  ;;  %p129_p3 = scmp.ne.s32.totalorder %s579_s13, %s575_s12 }
   0x8   : > { %s795_s20 = smov (%p30_p0, %s28_s20), 0  ;;  %p130_p5 = scmp.eq.s32.totalorder %s443_s19, 1 }
   0x9   : > { %p659_p4 = por %p124_p2, %p123_p1  ;;  %s110_s23 = ssub.s32 %s591_s16, %s795_s20 }
   0xa   : > { %p448_p6 = scmp.ge.s32.totalorder %s595_s17, 1  ;;  %p111_p7 = scmp.eq.s32.totalorder %s110_s23, 0 }
   0xb   : > { %p666_p8 = por %p130_p5, %p129_p3  ;;  %p171_p9 = scmp.lt.s32.totalorder %s595_s17, 3 }
   0xc   : > { %s672_s25 = scalar_select %p111_p7, %s583_s14, %s113_s21  }
   0xd   : > { %p172_p10 = pnand %p448_p6, %p171_p9 }
   0xe   : > { %p203_p11 = scmp.lt.s32.totalorder (!%p172_p10), %s587_s15, 1  ;;  %s200_s10 = sand.u32 (!%p172_p10), 1, %s579_s13  }
   0xf   : > { %175 = sbr.rel (%p172_p10) target bundleno = 569 (0x239), region = 32  ;;  %s449_s11 = sshll.u32 (!%p172_p10), %s200_s10, 3 }
  0x10   : > { %s453_s18 = sshll.u32 (!%p172_p10), %s587_s15, 3  ;;  %s202_s26 = scalar_lea.vmem (!%p172_p10), [#allocation3], %s449_s11 }
  0x11   : > { %s340_s23 = scalar_lea.hbm (!%p172_p10), %s786_s3, %s453_s18  ;;  %s537_s6 = scalar_lea.hbm (!%p172_p10), %s786_s3, 16 }
  0x12   : > { %s344_s28 = sshll.u32 (!%p172_p10), %s340_s23, 4  ;;  %s345_s28 = int_to_ptr.hbm [resolvable:$true] %s344_s28 }
  0x13   : > { %s531_s29 = sshra.s32 (!%p172_p10), %s345_s28, 4  ;;  %s532_s29 = int_to_ptr.hbm [resolvable:$true] %s531_s29 }
  0x14   : > { %v227_v0 = vld [vmem:[%s784_s1 + $0x18] sm:$0xff]  ;;  %v226_v1 = vld [vmem:[%s784_s1 + $0x10] sm:$0xff]  ;;  %v225_v4 = vld [vmem:[%s784_s1 + $0x8] sm:$0xff]  ;;  %s204_s9 = scalar_select %p203_p11, %s587_s15, 1  ;;  %vm221_vm0 = vcmask 261120   ;;  %v597_v21 = vmov 0.0  }
  0x15   : > { %244 = vmatpush.msra.mxu0 %v227_v0  ;;  %v269_v2 = vld [vmem:[%s785_s2 + $0x78] sm:$0xff]  ;;  %v268_v3 = vld [vmem:[%s785_s2 + $0x70] sm:$0xff]  ;;  %v267_v5 = vld [vmem:[%s785_s2 + $0x68] sm:$0xff]  ;;  %222 = vst.msk [vmem:[#allocation2] sm:$0xff] %vm221_vm0, %v597_v21  ;;  %v598_v31 = vmov 32.0   ;;  %s330_s15 = scalar_lea.sflag [#allocation4], %s200_s10  ;;  %p538_p1 = scmp.lt.s32.totalorder %s532_s29, %s786_s3 }
  0x16   : > { %270 = vmatpush.msra.mxu1 %v269_v2  ;;  %v224_v6 = vld [vmem:[%s784_s1] sm:$0xff]  ;;  %s450_s21 = sshll.u32 %s204_s9, 3  ;;  %v265_v9 = vld [vmem:[%s785_s2 + $0x58] sm:$0xff]  ;;  %v264_v10 = vld [vmem:[%s785_s2 + $0x50] sm:$0xff]  ;;  %513 = vrcp.f32 %v598_v31  ;;  %s533_s30 = scalar_lea.hbm %s532_s29, 8 }
  0x17   : > { %245 = vmatpush.msra.mxu0 %v226_v1  ;;  %s206_s27 = scalar_lea.vmem %s783_s0, %s450_s21  ;;  %v266_v7 = vld [vmem:[%s785_s2 + $0x60] sm:$0xff]  ;;  %v263_v11 = vld [vmem:[%s785_s2 + $0x48] sm:$0xff]  ;;  %v261_v13 = vld [vmem:[%s785_s2 + $0x38] sm:$0xff]  ;;  %p534_p12 = scmp.ne.s32.totalorder %s532_s29, %s533_s30 }
  0x18   : > { %271 = vmatpush.msra.mxu1 %v268_v3  ;;  %v223_v8 = vld [vmem:[%s206_s27] sm:$0xff]  ;;  %v260_v14 = vld [vmem:[%s785_s2 + $0x30] sm:$0xff]  ;;  %v259_v15 = vld [vmem:[%s785_s2 + $0x28] sm:$0xff]  ;;  %s342_s27 = sshll.u32 %s202_s26, 4  ;;  %p539_p2 = scmp.lt.s32.totalorder %s537_s6, %s533_s30  ;;  %s343_s27 = int_to_ptr.vmem [resolvable:$true] %s342_s27 }
  0x19   : > { %246 = vmatpush.msra.mxu0 %v225_v4  ;;  %v262_v12 = vld [vmem:[%s785_s2 + $0x40] sm:$0xff]  ;;  %v257_v17 = vld [vmem:[%s785_s2 + $0x18] sm:$0xff]  ;;  %v256_v18 = vld [vmem:[%s785_s2 + $0x10] sm:$0xff]  ;;  %p535_p13 = pnand %p534_p12, %p659_p4 }
  0x1a   : > { %272 = vmatpush.msra.mxu1 %v267_v5  ;;  %v258_v16 = vld [vmem:[%s785_s2 + $0x20] sm:$0xff]  ;;  %v255_v19 = vld [vmem:[%s785_s2 + $0x8] sm:$0xff]  ;;  %p540_p3 = por %p539_p2, %p538_p1 }
  0x1b   : > { %247 = vmatpush.msra.mxu0 %v224_v6  ;;  %v254_v20 = vld [vmem:[%s785_s2] sm:$0xff]  ;;  %p536_p0 = pneg %p535_p13 }
  0x1c   : > { %451 = vmatmul.msk.f32.vlgmr.msra.gmra.mxu0 %vm221_vm0, %v223_v8  ;;  %273 = vmatpush.msra.mxu1 %v266_v7  ;;  %v253_v24 = vld [vmem:[#allocation2] sm:$0xff]  ;;  %v514_v32 = vpop.eup %513 }
  0x1d   : > { %v303_v33 = vmul.f32 32.0, %v514_v32  ;;  %vm307_vm1 = vweird.f32 %v514_v32  ;;  %p541_p5 = pnand %p540_p3, %p536_p0 }
  0x1e   : > { %274 = vmatpush.msra.mxu1 %v265_v9 }
  0x1f   : > { %v304_v34 = vsub.f32 1.0, %v303_v33 }
  0x20   : > { %275 = vmatpush.msra.mxu1 %v264_v10 }
  0x21   : > { %v305_v35 = vmul.f32 %v514_v32, %v304_v34 }
  0x22   : > { %276 = vmatpush.msra.mxu1 %v263_v11 }
  0x23   : > { %v306_v36 = vadd.f32 %v514_v32, %v305_v35 }
  0x24   : > { %277 = vmatpush.msra.mxu1 %v262_v12 }
  0x25   : > { %v308_v37 = vsel %vm307_vm1, %v514_v32, %v306_v36 }
  0x26   : > { %278 = vmatpush.msra.mxu1 %v261_v13 }
  0x28   : > { %279 = vmatpush.msra.mxu1 %v260_v14 }
  0x2a   : > { %280 = vmatpush.msra.mxu1 %v259_v15 }
  0x2c   : > { %281 = vmatpush.msra.mxu1 %v258_v16 }
  0x2e   : > { %282 = vmatpush.msra.mxu1 %v257_v17 }
  0x30   : > { %283 = vmatpush.msra.mxu1 %v256_v18 }
  0x32   : > { %284 = vmatpush.msra.mxu1 %v255_v19 }
  0x34   : > { %285 = vmatpush.msra.mxu1 %v254_v20 }
  0x99   : > { %v249_v22 = vpop.f32.mrf.mxu0 }
  0x9a   : > { %v252_v23 = vmax.f32 %v249_v22, 0.0 }
  0x9c   : > { %286 = vmatmul.f32.vlgmr.msra.gmra.mxu1 %v252_v23 }
 0x119   : > { %v287_v25 = vpop.f32.mrf.mxu1 }
 0x11a   : > { %v290_v26 = vadd.f32 %v287_v25, %v253_v24 }
 0x11c   : > { %291 = vst.msk [vmem:[#allocation2] sm:$0xff] %vm221_vm0, %v290_v26 }
 0x123   : > { %v295_v27 = vld [vmem:[#allocation2] sm:$0xff] }
 0x124   : > { %v296_v28 = vadd.f32 %v295_v27, %v223_v8 }
 0x126   : > { %297 = vst.msk [vmem:[#allocation2] sm:$0xff] %vm221_vm0, %v296_v28 }
 0x12d   : > { %v298_v29 = vld [vmem:[#allocation2] sm:$0xff] }
 0x12e   : > { %v299_v30 = vsel %vm221_vm0, %v298_v29, 0.0 }
 0x12f   : > { %300 = vadd.xlane.f32.xlu0 %v299_v30 }
 0x1a2   : > { %v301_v38 = vpop.xlane.xlu0 %300 }
 0x1a3   : > { %v309_v39 = vmul.f32 %v308_v37, %v301_v38 }
 0x1a5   : > { %v310_v40 = vsub.f32 %v298_v29, %v309_v39 }
 0x1a7   : > { %v311_v41 = vmul.f32 %v310_v40, %v310_v40 }
 0x1a9   : > { %v312_v42 = vsel %vm221_vm0, %v311_v41, 0.0 }
 0x1aa   : > { %313 = vadd.xlane.f32.xlu0 %v312_v42 }
 0x21d   : > { %v314_v43 = vpop.xlane.xlu0 %313 }
 0x21e   : > { %v315_v44 = vmul.f32 %v314_v43, %v308_v37 }
 0x220   : > { %v316_v45 = vadd.f32 1e-05, %v315_v44 }
 0x222   : > { %515 = vrsqrt.f32 %v316_v45  ;;  %vm323_vm3 = vweird.f32 %v316_v45 }
 0x228   : > { %v516_v46 = vpop.eup %515 }
 0x229   : > { %v318_v47 = vmul.f32 %v516_v46, %v316_v45  ;;  %vm324_vm2 = vweird.f32 %v516_v46 }
 0x22a   : > { %vm325_vm4 = vmor %vm323_vm3, %vm324_vm2 }
 0x22b   : > { %v319_v48 = vmul.f32 %v516_v46, %v318_v47 }
 0x22d   : > { %v320_v49 = vmul.f32 0.5, %v319_v48 }
 0x22f   : > { %v321_v50 = vsub.f32 1.5, %v320_v49 }
 0x231   : > { %v322_v51 = vmul.f32 %v516_v46, %v321_v50 }
 0x233   : > { %v326_v52 = vsel %vm325_vm4, %v516_v46, %v322_v51 }
 0x234   : > { %v327_v53 = vmul.f32 %v326_v52, %v310_v40 }
 0x236   : > { %328 = vst.msk [vmem:[%s202_s26] sm:$0xff] %vm221_vm0, %v327_v53 }
 0x237   : > { %544 = shalt.err (!%p541_p5)
}
 0x238   : > { %456 = dma.vmem_to_hbm [thread:$0]  (%p659_p4), %s343_s27, 128, %s345_s28, %s330_s15  }
 0x239 PF: > { %p462_p6 = scmp.ge.s32.totalorder %s595_s17, 2  ;;  %s356_s9 = sand.u32 1, %s575_s12  }
 0x23a   : > { %s357_s10 = scalar_lea.sflag [#allocation4], %s356_s9 }
 0x23b   : > { %p459_p7 = pnand %p462_p6, %p666_p8 }
 0x23d   : > { %p460_p9 = pneg %p459_p7 }
 0x23f   : > { %570 = dma.done.wait (%p460_p9), %s357_s10, 128  }
 0x240   : > { %572 = vsyncadd (%p460_p9), %s357_s10, 4294967168  ;;  %s16_s17 = sadd.s32 1, %s595_s17   ;;  %s789_s12 = smov %s579_s13 }
 0x241   : > { %p13_p10 = scmp.ge.s32.totalorder %s16_s17, 4   ;;  %s790_s13 = smov %s583_s14 }
 0x242   : > { %s791_s14 = smov %s672_s25  ;;  %s792_s15 = smov %s591_s16 }
 0x243   : > { %s793_s16 = smov %s795_s20  ;;  %15 = sbr.rel (!%p13_p10) target bundleno = 4 (0x4), region = 81 }
 0x248   :  { %363 = vsyncpa [#allocation4], 1 }
 0x249   :  { %365 = vsyncpa [#allocation4 + $0x1], 1 }

</bundles_post_ra>
